<compile_context>
chip_gen: v5e
topology: v5e:2x2
jax: 0.10.0
libtpu: 0.0.40
codegen_flags: <defaults>
</compile_context>

<pallas_src>
import functools

import numpy as np
import jax
import jax.numpy as jnp
from jax.experimental import pallas as pl
from jax.experimental.pallas import tpu as pltpu


_LANE = 128
_MIN_TR = 16                                  # sublane tile; multiple of 16 keeps bf16 packing clean
_PER_INPUT_TILE_BUDGET = 2 * 1024 * 1024      # bytes/input tile (x2 inputs, x2 buffers ~ 8 MiB)
_TARGET_ROW_BLOCKS = 8                        # keep several parallel grid steps (v7x megacore, pipelining)
_VMEM_LIMIT_BYTES = 32 * 1024 * 1024          # safe scoped-VMEM limit on v5e/v6e/v7x


def _round_up(x, m):
    return ((x + m - 1) // m) * m


def _ceil_div(a, b):
    return -(-a // b)


def _weighted_l1_partial_kernel(x_ref, y_ref, w_ref, out_ref, *,
                                rows, row_len, tr, tc, mask_rows, mask_cols):
    """Partial sum of |x - y| * w over one (tr, tc) block, broadcast into an (8,128) tile.

    x_ref, y_ref : VMEM (tr, tc)       input dtype
    w_ref        : VMEM (1, tc)        f32 weights (region membership + 1/count folded in)
    out_ref      : VMEM (1, 1, 8, 128) f32 per-block partial sum
    """
    d = jnp.abs(x_ref[...] - y_ref[...]).astype(jnp.float32)

    valid = None
    if mask_rows:
        r = jax.lax.broadcasted_iota(jnp.int32, (tr, tc), 0) + pl.program_id(0) * tr
        valid = r < rows
    if mask_cols:
        c = jax.lax.broadcasted_iota(jnp.int32, (tr, tc), 1) + pl.program_id(1) * tc
        cm = c < row_len
        valid = cm if valid is None else (valid & cm)
    if valid is not None:
        d = jnp.where(valid, d, 0.0)

    partial = jnp.sum(d * w_ref[...])
    out_ref[...] = jnp.broadcast_to(partial, out_ref.shape)


def _choose_tiles(rows, row_len, window, itemsize):
    """Pick (tr, tc, grid_r, grid_c) under the VMEM budget with lane-dense tiles."""
    # Lane (last-dim) tile: as wide as the budget allows -> long contiguous DMAs.
    tc_cap = (_PER_INPUT_TILE_BUDGET // (_MIN_TR * itemsize)) // _LANE * _LANE
    tc_cap = max(tc_cap, _LANE)
    # `window` is always either a multiple of 128 or equal to the full row length,
    # so using it directly as a block dim is legal.
    tc = window if window <= tc_cap else tc_cap
    grid_c = _ceil_div(window, tc)

    # Sublane (row) tile: fill the budget, but keep several row blocks when possible
    # so v7x's two TensorCores both get work and the pipeline has depth.
    tr_budget = (_PER_INPUT_TILE_BUDGET // (tc * itemsize)) // _MIN_TR * _MIN_TR
    tr_budget = max(tr_budget, _MIN_TR)
    tr_parallel = max(_MIN_TR, _round_up(_ceil_div(rows, _TARGET_ROW_BLOCKS), _MIN_TR))
    tr = min(tr_budget, tr_parallel, _round_up(rows, _MIN_TR))
    grid_r = _ceil_div(rows, tr)
    return tr, tc, grid_r, grid_c


def _window_len(w_flat, row_len):
    """Smallest legal column-prefix length covering all nonzero weights."""
    nz = np.flatnonzero(w_flat)
    if nz.size == 0:
        return row_len
    need = int(nz[-1]) + 1
    padded = _round_up(need, _LANE)
    return row_len if padded >= row_len else padded


def _weighted_l1_sum(x2d, y2d, w_row, window):
    """sum(|x2d - y2d| * w_row[None, :window]) via a tiled lane-dense Pallas reduction.

    x2d, y2d : (rows, row_len) arrays (any float dtype)
    w_row    : numpy float32 weights (zeros outside the weighted region)
    window   : static prefix length (multiple of 128, or == row_len) covering all weights
    """
    rows, row_len = x2d.shape
    itemsize = jnp.dtype(x2d.dtype).itemsize
    tr, tc, grid_r, grid_c = _choose_tiles(rows, row_len, window, itemsize)

    padded_w = grid_c * tc
    w = np.zeros((1, padded_w), np.float32)
    w[0, :window] = w_row[:window]
    w_in = jnp.asarray(w)

    kernel = functools.partial(
        _weighted_l1_partial_kernel,
        rows=rows, row_len=row_len, tr=tr, tc=tc,
        mask_rows=(grid_r * tr > rows),
        mask_cols=(grid_c * tc > row_len),
    )

    read_cols = min(grid_c * tc, row_len)
    flops = 4 * rows * read_cols                               # sub + abs + mul + add
    bytes_acc = (2 * rows * read_cols * itemsize + padded_w * 4
                 + grid_r * grid_c * 8 * 128 * 4)

    out = pl.pallas_call(
        kernel,
        grid=(grid_r, grid_c),
        in_specs=[
            pl.BlockSpec((tr, tc), lambda i, j: (i, j)),
            pl.BlockSpec((tr, tc), lambda i, j: (i, j)),
            pl.BlockSpec((1, tc), lambda i, j: (0, j)),
        ],
        out_specs=pl.BlockSpec((1, 1, 8, 128), lambda i, j: (i, j, 0, 0)),
        out_shape=jax.ShapeDtypeStruct((grid_r, grid_c, 8, 128), jnp.float32),
        compiler_params=pltpu.CompilerParams(
            dimension_semantics=("parallel", "parallel"),
            vmem_limit_bytes=_VMEM_LIMIT_BYTES,
        ),
        cost_estimate=pl.CostEstimate(
            flops=flops, transcendentals=0, bytes_accessed=bytes_acc),
    )(x2d, y2d, w_in)

    return jnp.sum(out[:, :, 0, 0])


class InpaintingLossPallas:
    """JAX/Pallas port of InpaintingLoss (2D branch) with elementwise L1 + .mean()."""

    def __init__(self, network_G, loss=None):
        # TODO(synk): only the elementwise-L1 + .mean() loss is fused into the kernel;
        # arbitrary user-supplied `loss` callables are not supported.
        self.dim = 3 if "3D" in network_G else 2

    def __call__(self, inp, tgt, inpainting_pixel, inpainting_mode, **kwargs):
        if self.dim == 3:
            # TODO(synk): 3D branch (union of axis-aligned boxes via flat gather) not implemented.
            raise NotImplementedError("3D inpainting loss not implemented")

        mode = tuple(bool(m) for m in np.asarray(inpainting_mode))
        p = [int(v) for v in np.asarray(inpainting_pixel)]
        B, C, H, W = inp.shape
        BC, BCH, HW = B * C, B * C * H, H * W

        as_bc = lambda a: a.reshape(BC, HW)     # one flattened image per row
        as_bch = lambda a: a.reshape(BCH, W)    # one image row per row (lane-dense column strips)

        jobs = []  # (x2d, y2d, weight_row np.float32, window)

        if mode == (True, False):
            p1 = p[1]
            count = BC * p1 * W
            if count == 0:
                return jnp.float32(np.nan)      # torch .mean() over an empty slice -> NaN
            w = np.zeros(HW, np.float64)
            w[: p1 * W] = 1.0 / count
            w = w.astype(np.float32)
            jobs.append((as_bc(inp), as_bc(tgt), w, _window_len(w, HW)))

        elif mode == (False, True):
            p2 = p[2]
            count = BC * H * p2
            if count == 0:
                return jnp.float32(np.nan)
            if W >= _LANE:
                # Only read the round_up(p2,128)-wide column strip of every image row.
                w = np.zeros(W, np.float64)
                w[:p2] = 1.0 / count
                w = w.astype(np.float32)
                jobs.append((as_bch(inp), as_bch(tgt), w, _window_len(w, W)))
            else:
                w2 = np.zeros((H, W), np.float64)
                w2[:, :p2] = 1.0 / count
                w = w2.reshape(-1).astype(np.float32)
                jobs.append((as_bc(inp), as_bc(tgt), w, _window_len(w, HW)))

        elif mode == (True, True):
            p1, p2 = p[1], p[2]
            count_l = BC * H * p2
            count_tr = BC * p1 * (W - p2)
            if count_l == 0 or count_tr == 0:
                return jnp.float32(np.nan)
            if W >= _LANE:
                # Two narrow passes instead of one full-image pass.
                wl = np.zeros(W, np.float64)
                wl[:p2] = 1.0 / count_l
                wl = wl.astype(np.float32)
                jobs.append((as_bch(inp), as_bch(tgt), wl, _window_len(wl, W)))

                wt2 = np.zeros((H, W), np.float64)
                wt2[:p1, p2:] = 1.0 / count_tr
                wt = wt2.reshape(-1).astype(np.float32)
                jobs.append((as_bc(inp), as_bc(tgt), wt, _window_len(wt, HW)))
            else:
                w2 = np.zeros((H, W), np.float64)
                w2[:, :p2] += 1.0 / count_l
                w2[:p1, p2:] += 1.0 / count_tr
                w = w2.reshape(-1).astype(np.float32)
                jobs.append((as_bc(inp), as_bc(tgt), w, _window_len(w, HW)))
        else:
            raise ValueError(f"Unsupported inpainting_mode: {mode}")

        total = None
        for x2d, y2d, w, window in jobs:
            s = _weighted_l1_sum(x2d, y2d, w, window)
            total = s if total is None else total + s
        return total


def _reference_loss(inp, tgt, inpainting_pixel, inpainting_mode):
    """Pure-JAX reference mirroring the PyTorch forward (2D, L1 + mean)."""
    mode = tuple(bool(m) for m in np.asarray(inpainting_mode))
    p = [int(v) for v in np.asarray(inpainting_pixel)]
    if mode == (True, False):
        return jnp.mean(jnp.abs(inp[..., : p[1], :] - tgt[..., : p[1], :]))
    elif mode == (False, True):
        return jnp.mean(jnp.abs(inp[..., : p[2]] - tgt[..., : p[2]]))
    elif mode == (True, True):
        l_left = jnp.mean(jnp.abs(inp[..., : p[2]] - tgt[..., : p[2]]))
        l_tr = jnp.mean(jnp.abs(inp[..., : p[1], p[2]:] - tgt[..., : p[1], p[2]:]))
        return l_left + l_tr
    else:
        raise ValueError(mode)


if __name__ == "__main__":
    key = jax.random.PRNGKey(0)
    loss_fn = InpaintingLossPallas(network_G="unet_2D")

    # inpainting_pixel indexed as [.., rows, cols] per the PyTorch code (p[1], p[2])
    inpainting_pixel = np.array([0, 6, 5], dtype=np.int64)
    modes = (
        np.array([True, False]),
        np.array([False, True]),
        np.array([True, True]),
    )

    # Case 1: small W (< 128) -> fused (B*C, H*W) layout paths.
    # Case 2: wide W (>= 128), awkward B*C -> (B*C*H, W) strip layout + row masking paths.
    cases = (((2, 4, 16, 16), 1), ((3, 1, 16, 160), 2))

    for (B, C, H, W), salt in cases:
        k1, k2 = jax.random.split(jax.random.fold_in(key, salt))
        inp = jax.random.normal(k1, (B, C, H, W), dtype=jnp.float32)
        tgt = jax.random.normal(k2, (B, C, H, W), dtype=jnp.float32)
        for mode in modes:
            out = loss_fn(inp, tgt, inpainting_pixel, mode)
            out = jax.block_until_ready(out)
            ref = _reference_loss(inp, tgt, inpainting_pixel, mode)
            assert np.allclose(np.asarray(out), np.asarray(ref), rtol=1e-5, atol=1e-5), (
                (B, C, H, W), mode.tolist(), float(out), float(ref))

    print("KERNEL_OK")
</pallas_src>

<mosaic_0001>
module attributes {stable_mosaic.version = 11 : i64} {
  func.func @_weighted_l1_partial_kernel(%arg0: i32, %arg1: i32, %arg2: memref<16x128xf32, #tpu.memory_space<vmem>>, %arg3: memref<16x128xf32, #tpu.memory_space<vmem>>, %arg4: memref<1x128xf32, #tpu.memory_space<vmem>>, %arg5: memref<1x1x8x128xf32, #tpu.memory_space<vmem>>) attributes {dimension_semantics = [#tpu.dimension_semantics<parallel>, #tpu.dimension_semantics<parallel>], iteration_bounds = array<i64: 1, 1>, scalar_prefetch = 0 : i64, scratch_operands = 0 : i64, tpu.core_type = #tpu.core_type<tc>, window_params = [{transform_indices = @transform_0, window_bounds = array<i64: 16, 128>}, {transform_indices = @transform_1, window_bounds = array<i64: 16, 128>}, {transform_indices = @transform_2, window_bounds = array<i64: 1, 128>}, {transform_indices = @transform_3, window_bounds = array<i64: 1, 1, 8, 128>}]} {
    %c0 = arith.constant 0 : index
    %c0_0 = arith.constant 0 : index
    %0 = vector.load %arg2[%c0, %c0_0] : memref<16x128xf32, #tpu.memory_space<vmem>>, vector<16x128xf32>
    %c0_1 = arith.constant 0 : index
    %c0_2 = arith.constant 0 : index
    %1 = vector.load %arg3[%c0_1, %c0_2] : memref<16x128xf32, #tpu.memory_space<vmem>>, vector<16x128xf32>
    %2 = arith.subf %0, %1 : vector<16x128xf32>
    %3 = math.absf %2 : vector<16x128xf32>
    %4 = tpu.iota {dimensions = array<i32: 0>} : vector<16x128xi32>
    %c16_i32 = arith.constant 16 : i32
    %5 = arith.muli %arg0, %c16_i32 : i32
    %6 = vector.broadcast %5 : i32 to vector<16x128xi32>
    %7 = arith.addi %4, %6 : vector<16x128xi32>
    %c8_i32 = arith.constant 8 : i32
    %8 = vector.broadcast %c8_i32 : i32 to vector<16x128xi32>
    %9 = arith.cmpi slt, %7, %8 : vector<16x128xi32>
    %cst = arith.constant 0.000000e+00 : f32
    %10 = vector.broadcast %cst : f32 to vector<16x128xf32>
    %11 = arith.select %9, %3, %10 : vector<16x128xi1>, vector<16x128xf32>
    %c0_3 = arith.constant 0 : index
    %c0_4 = arith.constant 0 : index
    %12 = vector.load %arg4[%c0_3, %c0_4] : memref<1x128xf32, #tpu.memory_space<vmem>>, vector<1x128xf32>
    %13 = vector.broadcast %12 : vector<1x128xf32> to vector<16x128xf32>
    %14 = arith.mulf %11, %13 : vector<16x128xf32>
    %15 = vector.shape_cast %14 : vector<16x128xf32> to vector<1x16x128xf32>
    %cst_5 = arith.constant dense<0.000000e+00> : vector<1xf32>
    %16 = vector.multi_reduction <add>, %15, %cst_5 [1, 2] : vector<1x16x128xf32> to vector<1xf32>
    %17 = vector.shape_cast %16 : vector<1xf32> to vector<1x1x1xf32>
    %18 = vector.extract %17[0, 0, 0] : f32 from vector<1x1x1xf32>
    %19 = vector.broadcast %18 : f32 to vector<1x1x8x128xf32>
    %c0_6 = arith.constant 0 : index
    %c0_7 = arith.constant 0 : index
    %c0_8 = arith.constant 0 : index
    %c0_9 = arith.constant 0 : index
    %20 = vector.load %arg5[%c0_6, %c0_7, %c0_8, %c0_9] : memref<1x1x8x128xf32, #tpu.memory_space<vmem>>, vector<1x1x8x128xf32>
    tpu.vector_store %arg5[%c0_6, %c0_7, %c0_8, %c0_9], %19 {strides = array<i32>} : memref<1x1x8x128xf32, #tpu.memory_space<vmem>>, vector<1x1x8x128xf32>,
    return
  }
  func.func @transform_0(%arg0: i32, %arg1: i32) -> (i32, i32) {
    %c0_i32 = arith.constant 0 : i32
    return %arg0, %arg1 : i32, i32
  }
  func.func @transform_1(%arg0: i32, %arg1: i32) -> (i32, i32) {
    %c0_i32 = arith.constant 0 : i32
    return %arg0, %arg1 : i32, i32
  }
  func.func @transform_2(%arg0: i32, %arg1: i32) -> (i32, i32) {
    %c0_i32 = arith.constant 0 : i32
    %c0_i32_0 = arith.constant 0 : i32
    return %c0_i32, %arg1 : i32, i32
  }
  func.func @transform_3(%arg0: i32, %arg1: i32) -> (i32, i32, i32, i32) {
    %c0_i32 = arith.constant 0 : i32
    %c0_i32_0 = arith.constant 0 : i32
    %c0_i32_1 = arith.constant 0 : i32
    return %arg0, %arg1, %c0_i32, %c0_i32_0 : i32, i32, i32, i32
  }
}

</mosaic_0001>

<bundles_post_ra>
// kernel: tpu_custom_call.1
= control target key start
LH: loop header
LB: loop body
LE: loop exit
PB: predicated region body
PF: predicated region fallthrough
CT: control target
= control target key end

     0   :  { %8 = vsyncpa [#allocation3], 0  ;;  %s227_s0 = inlined_call_operand.hbm [shape: f32[8,256], index: 0, kind: input, shape index: {}]   ;;  %s228_s1 = inlined_call_operand.hbm [shape: f32[8,256], index: 1, kind: input, shape index: {}]   ;;  %s229_s2 = inlined_call_operand.vmem [shape: f32[1,128], index: 2, kind: input, shape index: {}]   ;;  %s230_s3 = inlined_call_operand.hbm [shape: f32[1,1,8,128], index: 3, kind: output, shape index: {}]  }
   0x1   :  { %9 = vsyncpa [#allocation6], 0 }
   0x2   :  { %10 = vsyncpa [#allocation4], 0 }
   0x3   :  { %14 = vsyncadd [#allocation3], 128  ;;  %s15_s14 = sshll.u32 %s227_s0, 4  ;;  %s189_s15 = smov [#allocation2]   ;;  %s16_s14 = int_to_ptr.hbm [resolvable:$true] %s15_s14 }
   0x4   :  { %s17_s16 = sshll.u32 %s189_s15, 4  ;;  %s190_s17 = smov 256   ;;  %s18_s16 = int_to_ptr.vmem [resolvable:$true] %s17_s16 }
   0x5   :  { %s191_s18 = smov 128   ;;  %s192_s19 = smov 8  }
   0x6   :  { %23 = dma.hbm_to_vmem [thread:$0]  %s16_s14, 128, %s18_s16, [#allocation3], %s190_s17, %s191_s18, %s192_s19  }
   0x7   :  { %27 = vsyncadd [#allocation6], 128  ;;  %s28_s22 = sshll.u32 %s228_s1, 4  ;;  %s193_s23 = smov [#allocation5]   ;;  %s29_s22 = int_to_ptr.hbm [resolvable:$true] %s28_s22 }
   0x8   :  { %s30_s24 = sshll.u32 %s193_s23, 4  ;;  %s31_s24 = int_to_ptr.vmem [resolvable:$true] %s30_s24 }
   0x9   :  { %36 = dma.hbm_to_vmem [thread:$0]  %s29_s22, 128, %s31_s24, [#allocation6], %s190_s17, %s191_s18, %s192_s19  }
   0xa   :  { %183 = dma.done.wait [#allocation3], 256  }
   0xb   :  { %184 = vsyncadd [#allocation3], 4294967040 }
   0xc   :  { %185 = dma.done.wait [#allocation6], 256  }
   0xd   :  { %186 = vsyncadd [#allocation6], 4294967040  ;;  %v47_v0 = vld [vmem:[#allocation2] sm:$0xff]  ;;  %v49_v1 = vld [vmem:[#allocation5] sm:$0xff]  ;;  %s194_s1 = smov [#allocation7]   ;;  %s91_s29 = sshll.u32 %s230_s3, 4  ;;  %s92_s29 = int_to_ptr.hbm [resolvable:$true] %s91_s29 }
   0xe   :  { %v51_v2 = vsub.f32 %v47_v0, %v49_v1  ;;  %v110_v3 = vld [vmem:[%s229_s2] ss:$0 sm:$0xff]  ;;  %s89_s26 = sshll.u32 %s194_s1, 4  ;;  %s90_s26 = int_to_ptr.vmem [resolvable:$true] %s89_s26 }
   0xf   :  { %v71_v5 = vmul.f32 0.0, %v110_v3 }
  0x10   :  { %v53_v4 = vand.u32 2147483647, %v51_v2 }
  0x12   :  { %v70_v6 = vmul.f32 %v110_v3, %v53_v4 }
  0x14   :  { %v72_v7 = vadd.f32 %v71_v5, %v70_v6 }
  0x16   :  { %73 = vadd.xlane.f32.xlu0 %v72_v7 }
  0x89   :  { %v74_v8 = vpop.xlane.xlu0 %73 }
  0x8a   :  { %v75_v9 = vrot.slane %v74_v8, 4 }
  0x8c   :  { %v76_v10 = vadd.f32 %v75_v9, %v74_v8 }
  0x8e   :  { %v77_v11 = vrot.slane %v76_v10, 2 }
  0x90   :  { %v78_v12 = vadd.f32 %v77_v11, %v76_v10 }
  0x92   :  { %v79_v13 = vrot.slane %v78_v12, 1 }
  0x94   :  { %v80_v14 = vadd.f32 %v79_v13, %v78_v12 }
  0x96   :  { %102 = vpush %v80_v14 }
  0xc7   :  { %s103_s2 = spop %102 }
  0xc8   :  { %v82_v15 = vstv %s103_s2 }
  0xc9   :  { %83 = vst [vmem:[#allocation7] sm:$0xff] %v82_v15 }
  0xca   :  { %94 = dma.vmem_to_hbm [thread:$0]  %s90_s26, 128, %s92_s29, [#allocation4]  }
  0xcb   :  { %187 = dma.done.wait [#allocation4], 128  }
  0xcc   :  { %188 = vsyncadd [#allocation4], 4294967168 }
  0xcd   :  { %99 = vsyncpa [#allocation3], 1 }
  0xce   :  { %100 = vsyncpa [#allocation6], 1 }
  0xcf   :  { %101 = vsyncpa [#allocation4], 1 }

</bundles_post_ra>
